<compile_context>
chip_gen: v6e
topology: v6e:2x2x1
jax: 0.10.0
libtpu: 0.0.40
codegen_flags: <defaults>
</compile_context>

<pallas_src>
import functools

import jax
import jax.numpy as jnp
from jax.experimental import pallas as pl
from jax.experimental.pallas import tpu as pltpu


def _round_up(x: int, m: int) -> int:
    return ((x + m - 1) // m) * m


def _gene_encoder_kernel(ids_ref, emb_ref, gamma_ref, beta_ref, out_ref,
                         *, d_true: int, eps: float):
    # ids_ref   : VMEM (tr, 1) int32       (token ids for this row block)
    # emb_ref   : VMEM (V_pad, D_pad)      (resident table, single-buffered)
    # gamma_ref : VMEM (1, D_pad) f32
    # beta_ref  : VMEM (1, D_pad) f32
    # out_ref   : VMEM (tr, D_pad)
    tr, d_pad = out_ref.shape
    v_pad = emb_ref.shape[0]

    # ---- Embedding gather as a one-hot MXU matmul (exact) ----
    ids = ids_ref[...]                                            # (tr, 1)
    vocab_iota = jax.lax.broadcasted_iota(jnp.int32, (tr, v_pad), 1)
    one_hot = (vocab_iota == ids).astype(emb_ref.dtype)           # exact 0/1
    x = jnp.dot(one_hot, emb_ref[...],
                preferred_element_type=jnp.float32)               # (tr, D_pad) f32

    # ---- LayerNorm over the true D (padded columns are zero) ----
    inv_d = 1.0 / d_true
    mean = jnp.sum(x, axis=-1, keepdims=True) * inv_d
    centered = x - mean
    if d_pad != d_true:
        # Padded columns must not contribute to the variance.
        col = jax.lax.broadcasted_iota(jnp.int32, (tr, d_pad), 1)
        centered_v = jnp.where(col < d_true, centered, 0.0)
    else:
        centered_v = centered
    var = jnp.sum(centered_v * centered_v, axis=-1, keepdims=True) * inv_d
    inv = jax.lax.rsqrt(var + eps)                                # LN default eps inside rsqrt
    y = centered * inv * gamma_ref[...] + beta_ref[...]

    # ---- Single, lane-dense output store ----
    out_ref[...] = y.astype(out_ref.dtype)


def gene_encoder(tokens, emb_table, gamma, beta, *, eps=1e-5, block_rows=1024):
    """tokens: (...,) int; emb_table: (V, D); gamma/beta: (D,) -> (..., D)."""
    token_shape = tokens.shape
    V, D = emb_table.shape
    itemsize = jnp.dtype(emb_table.dtype).itemsize

    flat_ids = tokens.reshape(-1).astype(jnp.int32)
    flat_ids = jnp.clip(flat_ids, 0, V - 1)   # NOTE: PyTorch would raise on OOB ids
    n_rows = flat_ids.shape[0]

    # Row-block size: multiple of 8 sublanes, capped at `block_rows`.
    tr = max(8, min(block_rows, _round_up(n_rows, 8)))
    n_rows_pad = _round_up(n_rows, tr)
    if n_rows_pad != n_rows:
        flat_ids = jnp.pad(flat_ids, (0, n_rows_pad - n_rows))    # pad id 0 (valid row)
    ids2d = flat_ids.reshape(n_rows_pad, 1)

    # Pad vocab to a sublane multiple and D to a lane multiple (unmasked vst).
    v_pad = _round_up(V, 8)
    d_pad = _round_up(D, 128)
    table = emb_table
    if (v_pad, d_pad) != (V, D):
        table = jnp.pad(emb_table, ((0, v_pad - V), (0, d_pad - D)))
    gamma2d = jnp.pad(gamma.astype(jnp.float32), (0, d_pad - D)).reshape(1, d_pad)
    beta2d = jnp.pad(beta.astype(jnp.float32), (0, d_pad - D)).reshape(1, d_pad)

    # ---- Generation-aware VMEM sizing (single-buffered table) ----
    table_bytes = v_pad * d_pad * itemsize
    tile_bytes = (2 * tr * d_pad * itemsize       # double-buffered output tile
                  + 2 * tr * 128 * 4              # double-buffered (tr,1) id block (lane-padded)
                  + tr * v_pad * 4                # one-hot intermediate (worst case in VMEM)
                  + tr * d_pad * 4                # f32 gather/normalize intermediate
                  + 2 * d_pad * 4 * 2)            # gamma / beta
    need = table_bytes + tile_bytes
    if need > (40 << 20):
        # TODO(synk): HBM-resident table (memory_space=pl.ANY) with manual
        # double-buffered DMA gather for vocabs that do not fit VMEM
        # (especially on v7x, which only has 64 MiB VMEM per TensorCore).
        raise NotImplementedError("embedding table too large for the "
                                  "VMEM-resident GeneEncoder path")
    vmem_limit = min(max(2 * need, 16 << 20), 48 << 20)

    kernel = functools.partial(_gene_encoder_kernel, d_true=D, eps=eps)

    out = pl.pallas_call(
        kernel,
        out_shape=jax.ShapeDtypeStruct((n_rows_pad, d_pad), emb_table.dtype),
        grid_spec=pltpu.PrefetchScalarGridSpec(
            num_scalar_prefetch=0,
            grid=(n_rows_pad // tr,),
            in_specs=[
                pl.BlockSpec((tr, 1), lambda i: (i, 0)),                  # ids, per-block
                pl.BlockSpec(memory_space=pltpu.MemorySpace.VMEM),        # table, resident
                pl.BlockSpec(memory_space=pltpu.MemorySpace.VMEM),        # gamma
                pl.BlockSpec(memory_space=pltpu.MemorySpace.VMEM),        # beta
            ],
            out_specs=pl.BlockSpec((tr, d_pad), lambda i: (i, 0)),
        ),
        compiler_params=pltpu.CompilerParams(
            dimension_semantics=("parallel",),     # row blocks independent -> v7x 2 TCs
            vmem_limit_bytes=vmem_limit,
        ),
    )(ids2d, table, gamma2d, beta2d)

    out = out[:n_rows, :D]
    return out.reshape(*token_shape, D)


def _reference(tokens, emb_table, gamma, beta, eps=1e-5):
    x = emb_table[tokens]                               # embedding lookup
    mean = jnp.mean(x, axis=-1, keepdims=True)
    var = jnp.mean((x - mean) ** 2, axis=-1, keepdims=True)
    return (x - mean) * jax.lax.rsqrt(var + eps) * gamma + beta


if __name__ == "__main__":
    # Small, module-consistent shapes (lane-dense embedding_dim).
    num_embeddings = 64
    embedding_dim = 128
    padding_idx = 0
    batch, seq = 2, 8

    key = jax.random.PRNGKey(0)
    k_emb, k_tok = jax.random.split(key)

    # nn.Embedding ~ N(0,1), padding_idx row zeroed; LayerNorm affine = ones/zeros.
    emb_table = jax.random.normal(k_emb, (num_embeddings, embedding_dim), dtype=jnp.float32)
    emb_table = emb_table.at[padding_idx].set(0.0)
    gamma = jnp.ones((embedding_dim,), dtype=jnp.float32)
    beta = jnp.zeros((embedding_dim,), dtype=jnp.float32)

    tokens = jax.random.randint(k_tok, (batch, seq), 0, num_embeddings, dtype=jnp.int32)

    out = gene_encoder(tokens, emb_table, gamma, beta)
    out = jax.block_until_ready(out)

    ref = _reference(tokens, emb_table, gamma, beta)
    assert out.shape == (batch, seq, embedding_dim)
    assert jnp.allclose(out, ref, atol=1e-5, rtol=1e-5), "mismatch vs reference"

    print("KERNEL_OK")
</pallas_src>

<mosaic_0001>
module attributes {stable_mosaic.version = 11 : i64} {
  func.func @_gene_encoder_kernel(%arg0: i32, %arg1: memref<16x1xi32, #tpu.memory_space<vmem>>, %arg2: memref<64x128xf32, #tpu.memory_space<vmem>>, %arg3: memref<1x128xf32, #tpu.memory_space<vmem>>, %arg4: memref<1x128xf32, #tpu.memory_space<vmem>>, %arg5: memref<16x128xf32, #tpu.memory_space<vmem>>) attributes {dimension_semantics = [#tpu.dimension_semantics<parallel>], iteration_bounds = array<i64: 1>, scalar_prefetch = 0 : i64, scratch_operands = 0 : i64, tpu.core_type = #tpu.core_type<tc>, window_params = [{transform_indices = @transform_0, window_bounds = array<i64: 16, 1>}, {pipeline_mode = #tpu.pipeline_mode<synchronous>, transform_indices = @transform_1, window_bounds = array<i64: 64, 128>}, {pipeline_mode = #tpu.pipeline_mode<synchronous>, transform_indices = @transform_2, window_bounds = array<i64: 1, 128>}, {pipeline_mode = #tpu.pipeline_mode<synchronous>, transform_indices = @transform_3, window_bounds = array<i64: 1, 128>}, {transform_indices = @transform_4, window_bounds = array<i64: 16, 128>}]} {
    %c0 = arith.constant 0 : index
    %c0_0 = arith.constant 0 : index
    %0 = vector.load %arg1[%c0, %c0_0] : memref<16x1xi32, #tpu.memory_space<vmem>>, vector<16x1xi32>
    %1 = tpu.iota {dimensions = array<i32: 1>} : vector<16x64xi32>
    %2 = vector.broadcast %0 : vector<16x1xi32> to vector<16x64xi32>
    %3 = arith.cmpi eq, %1, %2 : vector<16x64xi32>
    %4 = arith.extui %3 : vector<16x64xi1> to vector<16x64xi32>
    %5 = arith.sitofp %4 : vector<16x64xi32> to vector<16x64xf32>
    %c0_1 = arith.constant 0 : index
    %c0_2 = arith.constant 0 : index
    %6 = vector.load %arg2[%c0_1, %c0_2] : memref<64x128xf32, #tpu.memory_space<vmem>>, vector<64x128xf32>
    %cst = arith.constant dense<0.000000e+00> : vector<16x128xf32>
    %7 = tpu.matmul %5, %6, %cst {dimension_numbers = #tpu.dot_dimension_numbers<[1], [0], [0], [1], [0, 0, 1, 1], [], []>} : vector<16x64xf32>, vector<64x128xf32>, vector<16x128xf32> -> vector<16x128xf32>
    %cst_3 = arith.constant dense<0.000000e+00> : vector<16xf32>
    %8 = vector.multi_reduction <add>, %7, %cst_3 [1] : vector<16x128xf32> to vector<16xf32>
    %9 = vector.shape_cast %8 : vector<16xf32> to vector<16x1xf32>
    %cst_4 = arith.constant 7.812500e-03 : f32
    %10 = vector.broadcast %cst_4 : f32 to vector<16x1xf32>
    %11 = arith.mulf %9, %10 : vector<16x1xf32>
    %12 = vector.broadcast %11 : vector<16x1xf32> to vector<16x128xf32>
    %13 = arith.subf %7, %12 : vector<16x128xf32>
    %14 = arith.mulf %13, %13 : vector<16x128xf32>
    %cst_5 = arith.constant dense<0.000000e+00> : vector<16xf32>
    %15 = vector.multi_reduction <add>, %14, %cst_5 [1] : vector<16x128xf32> to vector<16xf32>
    %16 = vector.shape_cast %15 : vector<16xf32> to vector<16x1xf32>
    %cst_6 = arith.constant 7.812500e-03 : f32
    %17 = vector.broadcast %cst_6 : f32 to vector<16x1xf32>
    %18 = arith.mulf %16, %17 : vector<16x1xf32>
    %cst_7 = arith.constant 9.99999974E-6 : f32
    %19 = vector.broadcast %cst_7 : f32 to vector<16x1xf32>
    %20 = arith.addf %18, %19 : vector<16x1xf32>
    %21 = math.rsqrt %20 : vector<16x1xf32>
    %22 = vector.broadcast %21 : vector<16x1xf32> to vector<16x128xf32>
    %23 = arith.mulf %13, %22 : vector<16x128xf32>
    %c0_8 = arith.constant 0 : index
    %c0_9 = arith.constant 0 : index
    %24 = vector.load %arg3[%c0_8, %c0_9] : memref<1x128xf32, #tpu.memory_space<vmem>>, vector<1x128xf32>
    %25 = vector.broadcast %24 : vector<1x128xf32> to vector<16x128xf32>
    %26 = arith.mulf %23, %25 : vector<16x128xf32>
    %c0_10 = arith.constant 0 : index
    %c0_11 = arith.constant 0 : index
    %27 = vector.load %arg4[%c0_10, %c0_11] : memref<1x128xf32, #tpu.memory_space<vmem>>, vector<1x128xf32>
    %28 = vector.broadcast %27 : vector<1x128xf32> to vector<16x128xf32>
    %29 = arith.addf %26, %28 : vector<16x128xf32>
    %c0_12 = arith.constant 0 : index
    %c0_13 = arith.constant 0 : index
    %30 = vector.load %arg5[%c0_12, %c0_13] : memref<16x128xf32, #tpu.memory_space<vmem>>, vector<16x128xf32>
    tpu.vector_store %arg5[%c0_12, %c0_13], %29 {strides = array<i32>} : memref<16x128xf32, #tpu.memory_space<vmem>>, vector<16x128xf32>,
    return
  }
  func.func @transform_0(%arg0: i32) -> (i32, i32) {
    %c0_i32 = arith.constant 0 : i32
    %c0_i32_0 = arith.constant 0 : i32
    return %arg0, %c0_i32 : i32, i32
  }
  func.func @transform_1(%arg0: i32) -> (i32, i32) {
    %c0_i32 = arith.constant 0 : i32
    %c0_i32_0 = arith.constant 0 : i32
    %c0_i32_1 = arith.constant 0 : i32
    return %c0_i32, %c0_i32_0 : i32, i32
  }
  func.func @transform_2(%arg0: i32) -> (i32, i32) {
    %c0_i32 = arith.constant 0 : i32
    %c0_i32_0 = arith.constant 0 : i32
    %c0_i32_1 = arith.constant 0 : i32
    return %c0_i32, %c0_i32_0 : i32, i32
  }
  func.func @transform_3(%arg0: i32) -> (i32, i32) {
    %c0_i32 = arith.constant 0 : i32
    %c0_i32_0 = arith.constant 0 : i32
    %c0_i32_1 = arith.constant 0 : i32
    return %c0_i32, %c0_i32_0 : i32, i32
  }
  func.func @transform_4(%arg0: i32) -> (i32, i32) {
    %c0_i32 = arith.constant 0 : i32
    %c0_i32_0 = arith.constant 0 : i32
    return %arg0, %c0_i32 : i32, i32
  }
}

</mosaic_0001>

<bundles_post_ra>
// kernel: tpu_custom_call.1
= control target key start
LH: loop header
LB: loop body
LE: loop exit
PB: predicated region body
PF: predicated region fallthrough
CT: control target
= control target key end

     0   :  { %9 = vsyncpa [#allocation3], 0  ;;  %s342_s0 = inlined_call_operand.vmem [shape: s32[16,1], index: 0, kind: input, shape index: {}]   ;;  %s343_s1 = inlined_call_operand.hbm [shape: f32[64,128], index: 1, kind: input, shape index: {}]   ;;  %s344_s2 = inlined_call_operand.vmem [shape: f32[1,128], index: 2, kind: input, shape index: {}]   ;;  %s345_s3 = inlined_call_operand.vmem [shape: f32[1,128], index: 3, kind: input, shape index: {}]   ;;  %s346_s4 = inlined_call_operand.hbm [shape: f32[16,128], index: 4, kind: output, shape index: {}]  }
   0x1   :  { %10 = vsyncpa [#allocation4], 0  ;;  %s287_s15 = smov [#allocation2]  }
   0x2   :  { %s18_s16 = sshll.u32 %s287_s15, 4  ;;  %s19_s16 = int_to_ptr.vmem [resolvable:$true] %s18_s16 }
   0x3   :  { %s251_s17 = scalar_lea.vmem %s19_s16, 1024  ;;  %p256_p1 = scmp.lt.s32.totalorder %s19_s16, %s19_s16 }
   0x4   :  { %p252_p0 = scmp.ne.s32.totalorder %s19_s16, %s251_s17  ;;  %p257_p2 = scmp.lt.s32.totalorder %s251_s17, %s251_s17 }
   0x6   :  { %p258_p3 = por %p257_p2, %p256_p1 }
   0x8   :  { %p259_p4 = pnand %p258_p3, %p252_p0 }
   0xa   :  { %262 = shalt.err (!%p259_p4)
}
   0xb   :  { %s288_s18 = smov 128   ;;  %s289_s19 = smov 8  }
   0xc   :  { %24 = dma.hbm_to_vmem [thread:$0]  %s343_s1, 1024, %s19_s16, [#allocation3], %s288_s18, %s288_s18, %s289_s19  }
   0xd   :  { %283 = dma.done.wait [#allocation3], 1024  }
   0xe   :  { %284 = vsyncadd [#allocation3], 4294966272  ;;  %v290_v0 = vmov 0   ;;  %v32_v1 = vld [vmem:[%s342_s0] sm:$0xff]  ;;  %v55_v2 = vld [vmem:[#allocation2 + $0x38] sm:$0xff]  ;;  %v34_v11 = vlaneseq  ;;  %vm56_vm0 = vcmask 523264  }
   0xf   :  { %238 = vset.pattern.permute.xlu0 %v290_v0  ;;  %213 = vmatprep.subr.mxu0 %v55_v2  ;;  %v54_v3 = vld [vmem:[#allocation2 + $0x30] sm:$0xff]  ;;  %v33_v4 = vld [vmem:[%s342_s0 + $0x8] sm:$0xff]  ;;  %v52_v6 = vld [vmem:[#allocation2 + $0x20] sm:$0xff]  ;;  %v291_v14 = vmov 0.0   ;;  %s292_s28 = smov [#allocation5]  }
  0x10   :  { %37 = vperm.xlu0 %238, %v32_v1   ;;  %214 = vmatpush3.msra.mxu0 %v55_v2  ;;  %v53_v5 = vld [vmem:[#allocation2 + $0x28] sm:$0xff]  ;;  %v51_v7 = vld [vmem:[#allocation2 + $0x18] sm:$0xff]  ;;  %v50_v8 = vld [vmem:[#allocation2 + $0x10] sm:$0xff]  ;;  %v35_v12 = vand.u32 127, %v34_v11  ;;  %s185_s29 = sshll.u32 %s292_s28, 4  ;;  %s186_s29 = int_to_ptr.vmem [resolvable:$true] %s185_s29 }
  0x11   :  { %215 = vmatprep.subr.mxu0 %v54_v3  ;;  %v49_v9 = vld [vmem:[#allocation2 + $0x8] sm:$0xff]  ;;  %v48_v10 = vld [vmem:[#allocation2] sm:$0xff]  ;;  %s263_s30 = scalar_lea.vmem %s186_s29, 256  ;;  %p268_p6 = scmp.lt.s32.totalorder %s186_s29, %s186_s29 }
  0x12   :  { %216 = vmatpush3.msra.mxu0 %v54_v3  ;;  %v201_v35 = vld [vmem:[%s344_s2] ss:$0 sm:$0xff]  ;;  %p264_p5 = scmp.ne.s32.totalorder %s186_s29, %s263_s30  ;;  %p269_p7 = scmp.lt.s32.totalorder %s263_s30, %s263_s30 }
  0x13   :  { %217 = vmatprep.subr.mxu0 %v53_v5  ;;  %v202_v37 = vld [vmem:[%s345_s3] ss:$0 sm:$0xff] }
  0x14   :  { %40 = vperm.xlu0 %238, %v33_v4   ;;  %218 = vmatpush3.msra.mxu0 %v53_v5  ;;  %p270_p8 = por %p269_p7, %p268_p6 }
  0x15   :  { %219 = vmatprep.subr.mxu0 %v52_v6 }
  0x16   :  { %220 = vmatpush3.msra.mxu0 %v52_v6  ;;  %p271_p9 = pnand %p270_p8, %p264_p5 }
  0x17   :  { %221 = vmatprep.subr.mxu0 %v51_v7 }
  0x18   :  { %222 = vmatpush3.msra.mxu0 %v51_v7 }
  0x19   :  { %223 = vmatprep.subr.mxu0 %v50_v8 }
  0x1a   :  { %224 = vmatpush3.msra.mxu0 %v50_v8 }
  0x1b   :  { %225 = vmatprep.subr.mxu0 %v49_v9 }
  0x1c   :  { %226 = vmatpush3.msra.mxu0 %v49_v9 }
  0x1d   :  { %227 = vmatprep.subr.mxu0 %v48_v10 }
  0x1e   :  { %228 = vmatpush3.msra.mxu0 %v48_v10 }
  0x8b   :  { %v38_v13 = vpop.permute.xlu0 %37 }
  0x8c   :  { %vm42_vm1 = vcmp.eq.s32.totalorder %v35_v12, %v38_v13 }
  0x8d   :  { %v197_v15 = vsel %vm42_vm1, 1.0, %v291_v14 }
  0x8e   :  { %229 = vmatprep.mubr.msk.f32.mxu0 %vm56_vm0, %v197_v15 }
  0x8f   :  { %v41_v16 = vpop.permute.xlu0 %40 }
  0x90   :  { %vm43_vm2 = vcmp.eq.s32.totalorder %v35_v12, %v41_v16 }
  0x91   :  { %v198_v17 = vsel %vm43_vm2, 1.0, %v291_v14 }
  0x92   :  { %230 = vmatmul.mubr.msk.f32.vlgmr.msra.gmra.mxu0 %vm56_vm0, %v198_v17 }
 0x152   :  { %v231_v18 = vpop.f32.mrf.mxu0 }
 0x154   :  { %v129_v19 = vpop.f32.mrf.mxu0 }
 0x155   :  { %138 = vadd.xlane.f32.xlu1 %v129_v19 }
 0x159   :  { %140 = vadd.xlane.f32.xlu1 %v231_v18 }
 0x1de   :  { %v139_v20 = vpop.xlane.xlu1 %138 }
 0x1df   :  { %v142_v21 = vmul.f32 0.0078125, %v139_v20 }
 0x1e1   :  { %v144_v22 = vsub.f32 %v129_v19, %v142_v21 }
 0x1e2   :  { %v141_v23 = vpop.xlane.xlu1 %140 }
 0x1e3   :  { %v143_v24 = vmul.f32 0.0078125, %v141_v23  ;;  %v146_v25 = vmul.f32 %v144_v22, %v144_v22 }
 0x1e5   :  { %v145_v26 = vsub.f32 %v231_v18, %v143_v24  ;;  %148 = vadd.xlane.f32.xlu0 %v146_v25 }
 0x1e7   :  { %v147_v27 = vmul.f32 %v145_v26, %v145_v26 }
 0x1e9   :  { %150 = vadd.xlane.f32.xlu1 %v147_v27 }
 0x26e   :  { %v149_v28 = vpop.xlane.xlu0 %148 }
 0x26f   :  { %v152_v29 = vmul.f32 0.0078125, %v149_v28 }
 0x271   :  { %v154_v30 = vadd.f32 1e-05, %v152_v29 }
 0x272   :  { %v151_v31 = vpop.xlane.xlu1 %150 }
 0x273   :  { %239 = vrsqrt.f32 %v154_v30  ;;  %v153_v32 = vmul.f32 0.0078125, %v151_v31 }
 0x275   :  { %v155_v33 = vadd.f32 1e-05, %v153_v32 }
 0x277   :  { %241 = vrsqrt.f32 %v155_v33 }
 0x280   :  { %v240_v34 = vpop.eup %239 }
 0x281   :  { %v158_v36 = vmul.f32 %v240_v34, %v144_v22 }
 0x283   :  { %v167_v38 = vmul.f32 %v201_v35, %v158_v36 }
 0x284   :  { %v242_v39 = vpop.eup %241 }
 0x285   :  { %v159_v40 = vmul.f32 %v242_v39, %v145_v26  ;;  %v176_v41 = vadd.f32 %v202_v37, %v167_v38 }
 0x287   :  { %v168_v42 = vmul.f32 %v201_v35, %v159_v40  ;;  %178 = vst [vmem:[#allocation5] sm:$0xff] %v176_v41 }
 0x289   :  { %v177_v43 = vadd.f32 %v202_v37, %v168_v42 }
 0x28b   :  { %179 = vst [vmem:[#allocation5 + $0x8] sm:$0xff] %v177_v43 }
 0x28c   :  { %274 = shalt.err (!%p271_p9)
}
 0x28d   :  { %191 = dma.vmem_to_hbm [thread:$0]  %s186_s29, 256, %s346_s4, [#allocation4], %s288_s18, %s288_s18, %s289_s19  }
 0x28e   :  { %285 = dma.done.wait [#allocation4], 256  }
 0x28f   :  { %286 = vsyncadd [#allocation4], 4294967040 }
 0x290   :  { %195 = vsyncpa [#allocation3], 1 }
 0x291   :  { %196 = vsyncpa [#allocation4], 1 }

</bundles_post_ra>
